<compile_context>
chip_gen: v5e
topology: v5e:2x2
jax: 0.10.0
libtpu: 0.0.40
codegen_flags: <defaults>
</compile_context>

<pallas_src>
import jax
import jax.numpy as jnp
from jax.experimental import pallas as pl
from jax.experimental.pallas import tpu as pltpu

_SMALL_BYTES = 2 * 1024 * 1024         # <= this: one gridless kernel step
_TARGET_TILE_BYTES = 8 * 1024 * 1024   # per-buffer tile for the tiled path
_VMEM_LIMIT_BYTES = 40 * 1024 * 1024   # 2 in + 2 out 8 MiB buffers = 32 MiB
_LANES = (1024, 512, 256, 128)         # candidate lane widths (widest first)


def _identity_kernel(x_ref, o_ref):
    # Hot path: straight VMEM copy of the current tile (identity forward).
    o_ref[...] = x_ref[...]


def _min_sublane(dtype) -> int:
    """Minimum sublane multiple for a dtype (packed dtypes need more rows)."""
    itemsize = jnp.dtype(dtype).itemsize
    return {4: 8, 2: 16, 1: 32}.get(itemsize, 8)


def _copy_whole(x2d):
    """Single gridless call: whole (small) array copied in one kernel step."""
    return pl.pallas_call(
        _identity_kernel,
        out_shape=jax.ShapeDtypeStruct(x2d.shape, x2d.dtype),
    )(x2d)


def _copy_tiled(x2d, tile_rows):
    """Identity copy over a 2-D (R, C) array, tiled along rows.

    R need not be a multiple of tile_rows: Pallas masks the partial last block.
    """
    rows, lane = x2d.shape
    return pl.pallas_call(
        _identity_kernel,
        out_shape=jax.ShapeDtypeStruct((rows, lane), x2d.dtype),
        grid_spec=pltpu.PrefetchScalarGridSpec(
            num_scalar_prefetch=0,
            grid=(pl.cdiv(rows, tile_rows),),
            in_specs=[pl.BlockSpec((tile_rows, lane), lambda i: (i, 0))],
            out_specs=pl.BlockSpec((tile_rows, lane), lambda i: (i, 0)),
        ),
        compiler_params=pltpu.CompilerParams(
            dimension_semantics=("parallel",),
            vmem_limit_bytes=_VMEM_LIMIT_BYTES,
        ),
    )(x2d)


def _copy_2d(x2d):
    """Pick the gridless or tiled identity-copy path for a lane-dense slab."""
    rows, lane = x2d.shape
    itemsize = jnp.dtype(x2d.dtype).itemsize
    nbytes = rows * lane * itemsize
    if nbytes <= _SMALL_BYTES:
        return _copy_whole(x2d)

    sub = _min_sublane(x2d.dtype)
    # ~8 MiB per buffer, rounded down to the sublane tile.
    tile_rows = (_TARGET_TILE_BYTES // (lane * itemsize)) // sub * sub
    # Keep at least 2 grid steps so both v7x TensorCores drive DMA.
    half = (rows + 1) // 2
    half_up = ((half + sub - 1) // sub) * sub
    tile_rows = max(sub, min(tile_rows, half_up))
    return _copy_tiled(x2d, tile_rows)


@jax.jit
def _identity_pipeline(img):
    """Flatten -> lane-dense slab -> Pallas identity copy -> original shape.

    All shape arithmetic is static at trace time; no padding is ever
    materialized for lane-divisible sizes.
    """
    orig_shape = img.shape
    n = img.size
    if n == 0:
        return img
    flat = img.reshape(-1)

    # Widest lane width that divides n exactly: reshape is free, no padding.
    lane = next((l for l in _LANES if n % l == 0), None)
    if lane is not None:
        return _copy_2d(flat.reshape(n // lane, lane)).reshape(orig_shape)

    # Ragged: n is not a multiple of 128.
    main_n = (n // 1024) * 1024
    if main_n == 0:
        # Tiny ragged tensor: one gridless step on a (1, n) view.
        return _copy_whole(flat.reshape(1, n)).reshape(orig_shape)
    # Lane-aligned prefix through the fast path, <1024-element tail gridless.
    main = _copy_2d(flat[:main_n].reshape(main_n // 1024, 1024)).reshape(-1)
    tail = _copy_whole(flat[main_n:].reshape(1, n - main_n)).reshape(-1)
    return jnp.concatenate([main, tail]).reshape(orig_shape)


def print_forward(img):
    """Equivalent of Print.forward: prints the shape and returns img unchanged.

    The identity data movement runs inside a Pallas kernel; the print itself is
    host-side glue (same as PyTorch's Python-level print) and fires every call
    because this wrapper is not jitted.
    """
    print(f"img: {img.shape}")
    return _identity_pipeline(img)


if __name__ == "__main__":
    key = jax.random.PRNGKey(0)

    # Small NCHW input consistent with an image-preprocessing transform
    # (exercises the gridless small-input path).
    x = jax.random.normal(key, (2, 4, 16, 16), dtype=jnp.float32)
    y = jax.block_until_ready(print_forward(x))
    assert y.shape == x.shape and y.dtype == x.dtype
    assert bool(jnp.all(y == x))

    # 4 MiB input: tiled path, lane=1024, >=2 parallel grid steps.
    x2 = jax.random.normal(jax.random.PRNGKey(1), (8, 8, 128, 128), dtype=jnp.float32)
    y2 = jax.block_until_ready(print_forward(x2))
    assert y2.shape == x2.shape and y2.dtype == x2.dtype
    assert bool(jnp.all(y2 == x2))

    # Ragged size (105 elements, not a multiple of 128): tiny gridless path.
    x3 = jax.random.normal(jax.random.PRNGKey(2), (3, 5, 7), dtype=jnp.float32)
    y3 = jax.block_until_ready(print_forward(x3))
    assert y3.shape == x3.shape and y3.dtype == x3.dtype
    assert bool(jnp.all(y3 == x3))

    print("KERNEL_OK")
</pallas_src>

<mosaic_0001>
module attributes {stable_mosaic.version = 11 : i64} {
  func.func @_identity_kernel(%arg0: memref<2x1024xf32, #tpu.memory_space<vmem>>, %arg1: memref<2x1024xf32, #tpu.memory_space<vmem>>) attributes {dimension_semantics = [], scalar_prefetch = 0 : i64, scratch_operands = 0 : i64, tpu.core_type = #tpu.core_type<tc>} {
    %c0 = arith.constant 0 : index
    %c0_0 = arith.constant 0 : index
    %0 = vector.load %arg0[%c0, %c0_0] : memref<2x1024xf32, #tpu.memory_space<vmem>>, vector<2x1024xf32>
    %c0_1 = arith.constant 0 : index
    %c0_2 = arith.constant 0 : index
    %1 = vector.load %arg1[%c0_1, %c0_2] : memref<2x1024xf32, #tpu.memory_space<vmem>>, vector<2x1024xf32>
    tpu.vector_store %arg1[%c0_1, %c0_2], %0 {strides = array<i32>} : memref<2x1024xf32, #tpu.memory_space<vmem>>, vector<2x1024xf32>,
    return
  }
}

</mosaic_0001>

<bundles_post_ra>
// kernel: _identity_pipeline.1
= control target key start
LH: loop header
LB: loop body
LE: loop exit
PB: predicated region body
PF: predicated region fallthrough
CT: control target
= control target key end

     0   :  { %s38_s0 = inlined_call_operand.vmem [shape: f32[2,1024], index: 0, kind: input, shape index: {}]   ;;  %s39_s1 = inlined_call_operand.vmem [shape: f32[2,1024], index: 1, kind: output, shape index: {}]  }
   0x1   :  { %v8_v0 = vld [vmem:[%s38_s0] sm:$0xff]  ;;  %v9_v1 = vld [vmem:[%s38_s0 + $0x8] sm:$0xff] }
   0x2   :  { %10 = vst [vmem:[%s39_s1] sm:$0xff] %v8_v0 }
   0x3   :  { %11 = vst [vmem:[%s39_s1 + $0x8] sm:$0xff] %v9_v1 }

</bundles_post_ra>
